<compile_context>
chip_gen: v7x
topology: tpu7x:2x2x1
jax: 0.10.0
libtpu: 0.0.40
codegen_flags: <defaults>
</compile_context>

<pallas_src>
import functools

import jax
import jax.numpy as jnp
from jax.experimental import pallas as pl
from jax.experimental.pallas import tpu as pltpu


def _round_up(n, m):
    return ((n + m - 1) // m) * m


def pack_laguerre_coeffs(coeffs, dtype=jnp.float32):
    """(I, O, D+1) parameter -> ((D+1)*I, O) MXU operand. Call once at init."""
    input_dim, output_dim, d1 = coeffs.shape
    k = d1 * input_dim
    # row index = d*I + i, matching the feats column layout in the kernel.
    return jnp.transpose(coeffs, (2, 0, 1)).reshape(k, output_dim).astype(dtype)


def _laguerre_kan_kernel(x_ref, coeff_ref, o_ref, feats_ref, *,
                         degree, alpha, input_dim):
    """x_ref: (TB, I)  coeff_ref: ((D+1)*I, O)  o_ref: (TB, O)  feats: (TB, (D+1)*I)."""
    I = input_dim
    x = jnp.tanh(x_ref[...].astype(jnp.float32))              # (TB, I), f32

    # Laguerre recurrence (f32 VPU math; degree is small & static).  Each
    # polynomial is written to a static column slice of the VMEM feats
    # scratch (column index = d*I + i) instead of a lane-axis concatenate.
    prev2 = jnp.ones_like(x)                                   # L_0
    feats_ref[:, 0:I] = prev2.astype(feats_ref.dtype)
    if degree > 0:
        prev1 = (1.0 + alpha) - x                              # L_1
        feats_ref[:, I:2 * I] = prev1.astype(feats_ref.dtype)
        for k in range(2, degree + 1):
            term1 = ((2.0 * (k - 1) + 1.0 + alpha) - x) * prev1
            term2 = (k - 1 + alpha) * prev2
            cur = (term1 - term2) / float(k)
            feats_ref[:, k * I:(k + 1) * I] = cur.astype(feats_ref.dtype)
            prev2, prev1 = prev1, cur

    # Single fused MXU matmul: (TB, (D+1)*I) x ((D+1)*I, O) -> (TB, O).
    o_ref[...] = jnp.dot(feats_ref[...], coeff_ref[...],
                         preferred_element_type=jnp.float32).astype(o_ref.dtype)


def laguerre_kan_layer(x, coeffs, *, degree, alpha,
                       block_batch=4096,
                       mxu_dtype=jnp.float32,      # set jnp.bfloat16 for v6e/v7x (loosens tolerance)
                       out_dtype=jnp.float32):     # set jnp.bfloat16 to halve output HBM traffic
    """Pallas implementation of LaguerreKANLayer.forward.

    x      : any shape whose flatten gives (-1, input_dim)
    coeffs : either the raw (input_dim, output_dim, degree+1) parameter, or
             the pre-packed ((degree+1)*input_dim, output_dim) operand from
             pack_laguerre_coeffs (preferred: pack once at init).
    returns: (B, output_dim) with B = x.size // input_dim
    """
    if coeffs.ndim == 3:
        input_dim, output_dim, d1 = coeffs.shape
        assert d1 == degree + 1
        coeffs_k = pack_laguerre_coeffs(coeffs, dtype=mxu_dtype)
    else:
        k_dim, output_dim = coeffs.shape
        assert k_dim % (degree + 1) == 0
        input_dim = k_dim // (degree + 1)
        coeffs_k = coeffs.astype(mxu_dtype)

    K = (degree + 1) * input_dim

    x2d = x.reshape(-1, input_dim)
    if x2d.dtype != jnp.float32:
        x2d = x2d.astype(jnp.float32)
    batch = x2d.shape[0]

    # Batch tile: multiple of 8, capped at block_batch, and small enough that
    # modest batches still yield >= ~4 grid steps (v7x megacore sharding).
    tb = _round_up(max(1, -(-batch // 4)), 8)
    tb = max(8, min(tb, block_batch))
    grid = (pl.cdiv(batch, tb),)

    kernel = functools.partial(_laguerre_kan_kernel,
                               degree=degree, alpha=alpha, input_dim=input_dim)

    flops = (2 * batch * K * output_dim                       # fused matmul
             + batch * input_dim * (5 * max(degree, 1)))      # recurrence
    bytes_accessed = (x2d.dtype.itemsize * batch * input_dim
                      + coeffs_k.dtype.itemsize * K * output_dim
                      + jnp.dtype(out_dtype).itemsize * batch * output_dim)
    cost = pl.CostEstimate(flops=flops,
                           transcendentals=batch * input_dim,
                           bytes_accessed=bytes_accessed)

    out = pl.pallas_call(
        kernel,
        out_shape=jax.ShapeDtypeStruct((batch, output_dim), out_dtype),
        grid=grid,
        in_specs=[
            pl.BlockSpec((tb, input_dim), lambda i: (i, 0)),  # batch-tiled x
            pl.BlockSpec((K, output_dim), lambda i: (0, 0)),  # resident coeffs
        ],
        out_specs=pl.BlockSpec((tb, output_dim), lambda i: (i, 0)),
        scratch_shapes=[pltpu.VMEM((tb, K), mxu_dtype)],      # feats slab
        compiler_params=pltpu.CompilerParams(
            dimension_semantics=("parallel",),                # megacore on v7x
        ),
        cost_estimate=cost,
    )(x2d, coeffs_k)

    return out


def _reference(x, coeffs, *, degree, alpha):
    """Pure-JAX reference mirroring the PyTorch forward exactly."""
    input_dim = coeffs.shape[0]
    x = x.reshape(-1, input_dim)
    x = jnp.tanh(x)
    polys = [jnp.ones_like(x)]
    if degree > 0:
        polys.append(1.0 + alpha - x)
    for k in range(2, degree + 1):
        term1 = (2 * (k - 1) + 1 + alpha - x) * polys[k - 1]
        term2 = (k - 1 + alpha) * polys[k - 2]
        polys.append((term1 - term2) / k)
    lag = jnp.stack(polys, axis=-1)                           # (B, I, D+1)
    return jnp.einsum("bid,iod->bo", lag, coeffs)


if __name__ == "__main__":
    # Module hyperparameters.
    input_dim = 16
    output_dim = 32
    degree = 4
    alpha = 0.5

    key = jax.random.PRNGKey(0)
    kx, kc = jax.random.split(key)

    # Example input: (2, 4, 16, 16) -> flattened to (2*4*16, 16) inside layer.
    x = jax.random.normal(kx, (2, 4, 16, input_dim), dtype=jnp.float32)

    # Deterministic parameter init: normal(0, 1/(input_dim*(degree+1))).
    std = 1.0 / (input_dim * (degree + 1))
    coeffs = std * jax.random.normal(
        kc, (input_dim, output_dim, degree + 1), dtype=jnp.float32)

    # Hoisted, one-time coefficient packing (parameter-init time).
    coeffs_packed = jax.block_until_ready(pack_laguerre_coeffs(coeffs))

    y = laguerre_kan_layer(x, coeffs_packed, degree=degree, alpha=alpha)
    y = jax.block_until_ready(y)

    y_ref = _reference(x, coeffs, degree=degree, alpha=alpha)
    assert y.shape == (2 * 4 * 16, output_dim)
    assert jnp.allclose(y, y_ref, atol=1e-5, rtol=1e-5)

    print("KERNEL_OK")
</pallas_src>

<mosaic_0001>
module attributes {stable_mosaic.version = 11 : i64} {
  func.func @_laguerre_kan_kernel(%arg0: i32, %arg1: memref<32x16xf32, #tpu.memory_space<vmem>>, %arg2: memref<80x32xf32, #tpu.memory_space<vmem>>, %arg3: memref<32x32xf32, #tpu.memory_space<vmem>>, %arg4: memref<32x80xf32, #tpu.memory_space<vmem>>) attributes {dimension_semantics = [#tpu.dimension_semantics<parallel>], iteration_bounds = array<i64: 4>, scalar_prefetch = 0 : i64, scratch_operands = 1 : i64, tpu.core_type = #tpu.core_type<tc>, window_params = [{transform_indices = @transform_0, window_bounds = array<i64: 32, 16>}, {pipeline_mode = #tpu.pipeline_mode<synchronous>, transform_indices = @transform_1, window_bounds = array<i64: 80, 32>}, {transform_indices = @transform_2, window_bounds = array<i64: 32, 32>}]} {
    %c0 = arith.constant 0 : index
    %c0_0 = arith.constant 0 : index
    %0 = vector.load %arg1[%c0, %c0_0] : memref<32x16xf32, #tpu.memory_space<vmem>>, vector<32x16xf32>
    %1 = math.tanh %0 : vector<32x16xf32>
    %cst = arith.constant 1.000000e+00 : f32
    %2 = vector.broadcast %cst : f32 to vector<32x16xf32>
    %c0_1 = arith.constant 0 : index
    %c0_2 = arith.constant 0 : index
    %3 = vector.load %arg4[%c0_1, %c0_2] : memref<32x80xf32, #tpu.memory_space<vmem>>, vector<32x16xf32>
    tpu.vector_store %arg4[%c0_1, %c0_2], %2 {strides = array<i32>} : memref<32x80xf32, #tpu.memory_space<vmem>>, vector<32x16xf32>,
    %cst_3 = arith.constant 1.500000e+00 : f32
    %4 = vector.broadcast %cst_3 : f32 to vector<32x16xf32>
    %5 = arith.subf %4, %1 : vector<32x16xf32>
    %c0_4 = arith.constant 0 : index
    %c16 = arith.constant 16 : index
    %6 = vector.load %arg4[%c0_4, %c16] : memref<32x80xf32, #tpu.memory_space<vmem>>, vector<32x16xf32>
    tpu.vector_store %arg4[%c0_4, %c16], %5 {strides = array<i32>} : memref<32x80xf32, #tpu.memory_space<vmem>>, vector<32x16xf32>,
    %cst_5 = arith.constant 3.500000e+00 : f32
    %7 = vector.broadcast %cst_5 : f32 to vector<32x16xf32>
    %8 = arith.subf %7, %1 : vector<32x16xf32>
    %9 = arith.mulf %8, %5 : vector<32x16xf32>
    %cst_6 = arith.constant 1.500000e+00 : f32
    %10 = vector.broadcast %cst_6 : f32 to vector<32x16xf32>
    %11 = arith.mulf %10, %2 : vector<32x16xf32>
    %12 = arith.subf %9, %11 : vector<32x16xf32>
    %cst_7 = arith.constant 2.000000e+00 : f32
    %13 = vector.broadcast %cst_7 : f32 to vector<32x16xf32>
    %14 = arith.divf %12, %13 : vector<32x16xf32>
    %c0_8 = arith.constant 0 : index
    %c32 = arith.constant 32 : index
    %15 = vector.load %arg4[%c0_8, %c32] : memref<32x80xf32, #tpu.memory_space<vmem>>, vector<32x16xf32>
    tpu.vector_store %arg4[%c0_8, %c32], %14 {strides = array<i32>} : memref<32x80xf32, #tpu.memory_space<vmem>>, vector<32x16xf32>,
    %cst_9 = arith.constant 5.500000e+00 : f32
    %16 = vector.broadcast %cst_9 : f32 to vector<32x16xf32>
    %17 = arith.subf %16, %1 : vector<32x16xf32>
    %18 = arith.mulf %17, %14 : vector<32x16xf32>
    %cst_10 = arith.constant 2.500000e+00 : f32
    %19 = vector.broadcast %cst_10 : f32 to vector<32x16xf32>
    %20 = arith.mulf %19, %5 : vector<32x16xf32>
    %21 = arith.subf %18, %20 : vector<32x16xf32>
    %cst_11 = arith.constant 3.000000e+00 : f32
    %22 = vector.broadcast %cst_11 : f32 to vector<32x16xf32>
    %23 = arith.divf %21, %22 : vector<32x16xf32>
    %c0_12 = arith.constant 0 : index
    %c48 = arith.constant 48 : index
    %24 = vector.load %arg4[%c0_12, %c48] : memref<32x80xf32, #tpu.memory_space<vmem>>, vector<32x16xf32>
    tpu.vector_store %arg4[%c0_12, %c48], %23 {strides = array<i32>} : memref<32x80xf32, #tpu.memory_space<vmem>>, vector<32x16xf32>,
    %cst_13 = arith.constant 7.500000e+00 : f32
    %25 = vector.broadcast %cst_13 : f32 to vector<32x16xf32>
    %26 = arith.subf %25, %1 : vector<32x16xf32>
    %27 = arith.mulf %26, %23 : vector<32x16xf32>
    %cst_14 = arith.constant 3.500000e+00 : f32
    %28 = vector.broadcast %cst_14 : f32 to vector<32x16xf32>
    %29 = arith.mulf %28, %14 : vector<32x16xf32>
    %30 = arith.subf %27, %29 : vector<32x16xf32>
    %cst_15 = arith.constant 4.000000e+00 : f32
    %31 = vector.broadcast %cst_15 : f32 to vector<32x16xf32>
    %32 = arith.divf %30, %31 : vector<32x16xf32>
    %c0_16 = arith.constant 0 : index
    %c64 = arith.constant 64 : index
    %33 = vector.load %arg4[%c0_16, %c64] : memref<32x80xf32, #tpu.memory_space<vmem>>, vector<32x16xf32>
    tpu.vector_store %arg4[%c0_16, %c64], %32 {strides = array<i32>} : memref<32x80xf32, #tpu.memory_space<vmem>>, vector<32x16xf32>,
    %c0_17 = arith.constant 0 : index
    %c0_18 = arith.constant 0 : index
    %34 = vector.load %arg4[%c0_17, %c0_18] : memref<32x80xf32, #tpu.memory_space<vmem>>, vector<32x80xf32>
    %c0_19 = arith.constant 0 : index
    %c0_20 = arith.constant 0 : index
    %35 = vector.load %arg2[%c0_19, %c0_20] : memref<80x32xf32, #tpu.memory_space<vmem>>, vector<80x32xf32>
    %cst_21 = arith.constant dense<0.000000e+00> : vector<32x32xf32>
    %36 = tpu.matmul %34, %35, %cst_21 {dimension_numbers = #tpu.dot_dimension_numbers<[1], [0], [0], [1], [0, 0, 1, 1], [], []>} : vector<32x80xf32>, vector<80x32xf32>, vector<32x32xf32> -> vector<32x32xf32>
    %c0_22 = arith.constant 0 : index
    %c0_23 = arith.constant 0 : index
    %37 = vector.load %arg3[%c0_22, %c0_23] : memref<32x32xf32, #tpu.memory_space<vmem>>, vector<32x32xf32>
    tpu.vector_store %arg3[%c0_22, %c0_23], %36 {strides = array<i32>} : memref<32x32xf32, #tpu.memory_space<vmem>>, vector<32x32xf32>,
    return
  }
  func.func @transform_0(%arg0: i32) -> (i32, i32) {
    %c0_i32 = arith.constant 0 : i32
    %c0_i32_0 = arith.constant 0 : i32
    return %arg0, %c0_i32 : i32, i32
  }
  func.func @transform_1(%arg0: i32) -> (i32, i32) {
    %c0_i32 = arith.constant 0 : i32
    %c0_i32_0 = arith.constant 0 : i32
    %c0_i32_1 = arith.constant 0 : i32
    return %c0_i32, %c0_i32_0 : i32, i32
  }
  func.func @transform_2(%arg0: i32) -> (i32, i32) {
    %c0_i32 = arith.constant 0 : i32
    %c0_i32_0 = arith.constant 0 : i32
    return %arg0, %c0_i32 : i32, i32
  }
}

</mosaic_0001>

<bundles_post_ra>
// kernel: tpu_custom_call.1
= control target key start
LH: loop header
LB: loop body
LE: loop exit
PB: predicated region body
PF: predicated region fallthrough
CT: control target
= control target key end

     0   :  { %s618_s9 = smov 0   ;;  %s696_s0 = inlined_call_operand.vmem [shape: f32[128,16], index: 0, kind: input, shape index: {}]   ;;  %s697_s1 = inlined_call_operand.vmem [shape: f32[80,32], index: 1, kind: input, shape index: {}]   ;;  %s698_s2 = inlined_call_operand.vmem [shape: f32[128,32], index: 2, kind: output, shape index: {}]  }
   0x1 LB: > { %s480_s10 = sadd.s32 4294967295, %s596_s9   ;;  %p484_p0 = scmp.ge.s32.totalorder %s596_s9, 1  ;;  %s596_s9 = sphi %s618_s9, %s12_s9  }
   0x2   : > { %p113_p1 = scmp.lt.s32.totalorder %s596_s9, 5 }
   0x4   : > { %p114_p2 = pnand %p484_p0, %p113_p1 }
   0x5   : > { %s485_s11 = sshll.u32 (!%p114_p2), %s480_s10, 2  ;;  %vm155_vm0 = vcmask (!%p114_p2), 130048   ;;  %v598_v0 = vmov (!%p114_p2), 1.0   ;;  %s599_s16 = smov (!%p114_p2), 16   ;;  %v311_v22 = vld [vmem:[%s697_s1] sm:$0xff] (!%p114_p2)  ;;  %v312_v23 = vld [vmem:[%s697_s1 + $0x8] sm:$0xff] (!%p114_p2) }
   0x6   : > { %117 = sbr.rel (%p114_p2) target bundleno = 396 (0x18c), region = 28  ;;  %p136_p3 = scmp.lt.s32.totalorder (!%p114_p2), %s485_s11, 15  ;;  %157 = vst.msk [vmem:[#allocation2 + $0x8] sm:$0xff] (!%p114_p2), %vm155_vm0, %v598_v0  ;;  %156 = vst.msk [vmem:[#allocation2] sm:$0xff] (!%p114_p2), %vm155_vm0, %v598_v0  ;;  %v539_v34 = vpack.c.bf16 (!%p114_p2), %v312_v23, %v311_v22  ;;  %v313_v35 = vld [vmem:[%s697_s1 + $0x10] sm:$0xff] (!%p114_p2)  ;;  %v314_v36 = vld [vmem:[%s697_s1 + $0x18] sm:$0xff] (!%p114_p2) }
   0x7   : > { %158 = vst.msk [vmem:[#allocation2 + $0x10] sm:$0xff] (!%p114_p2), %vm155_vm0, %v598_v0  ;;  %159 = vst.msk [vmem:[#allocation2 + $0x18] sm:$0xff] (!%p114_p2), %vm155_vm0, %v598_v0  ;;  %v543_v40 = vpack.c.bf16 (!%p114_p2), %v314_v36, %v313_v35  ;;  %s600_s25 = smov (!%p114_p2), 32   ;;  %v315_v49 = vld [vmem:[%s697_s1 + $0x20] sm:$0xff] (!%p114_p2)  ;;  %v316_v50 = vld [vmem:[%s697_s1 + $0x28] sm:$0xff] (!%p114_p2)  ;;  %s601_s13 = smov (!%p114_p2), 48  }
   0x8   : > { %540 = vmatprep.subr.bf16.mxu0 (!%p114_p2), %v539_v34  ;;  %559 = vmatprep.subr.bf16.mxu1 (!%p114_p2), %v539_v34  ;;  %v547_v52 = vpack.c.bf16 (!%p114_p2), %v316_v50, %v315_v49  ;;  %v317_v63 = vld [vmem:[%s697_s1 + $0x30] sm:$0xff] (!%p114_p2)  ;;  %v318_v0 = vld [vmem:[%s697_s1 + $0x38] sm:$0xff] (!%p114_p2)  ;;  %s602_s14 = smov (!%p114_p2), 64   ;;  %vm180_vm1 = vcmask (!%p114_p2), 261248   ;;  %vm218_vm2 = vcmask (!%p114_p2), 392448   ;;  %vm260_vm3 = vcmask (!%p114_p2), 523648  }
   0x9   : > { %542 = vmatpush3.bf16.msra.mxu0 (!%p114_p2), %v539_v34  ;;  %564 = vmatpush3.bf16.msra.mxu1 (!%p114_p2), %v539_v34  ;;  %vm302_vm4 = vcmask (!%p114_p2), 654848   ;;  %vm321_vm5 = vcmask (!%p114_p2), 654336   ;;  %vm419_vm6 = vcmask (!%p114_p2), 261120  }
   0xa   : > { %544 = vmatprep.subr.bf16.mxu0 (!%p114_p2), %v543_v40  ;;  %560 = vmatprep.subr.bf16.mxu1 (!%p114_p2), %v543_v40 }
   0xd   : > { %s700_s11 = smov (!%p136_p3, %s485_s11), 15  ;;  %546 = vmatpush3.bf16.msra.mxu0 %v543_v40  ;;  %565 = vmatpush3.bf16.msra.mxu1 %v543_v40 }
   0xe   : > { %s486_s12 = sshll.u32 %s700_s11, 3  ;;  %548 = vmatprep.subr.bf16.mxu0 %v547_v52  ;;  %561 = vmatprep.subr.bf16.mxu1 %v547_v52 }
   0xf   : > { %s139_s15 = scalar_lea.vmem %s696_s0, %s486_s12  ;;  %s145_s17 = scalar_lea.vmem %s698_s2, %s486_s12 }
  0x10   : > { %v148_v1 = vld [vmem:[%s139_s15 + $0x8] sm:$0xff]  ;;  %v147_v2 = vld [vmem:[%s139_s15] sm:$0xff]  ;;  %v150_v3 = vld [vmem:[%s139_s15 + $0x18] sm:$0xff] }
  0x11   : > { %582 = vtanh.f32 %v148_v1  ;;  %v149_v4 = vld [vmem:[%s139_s15 + $0x10] sm:$0xff]  ;;  %550 = vmatpush3.bf16.msra.mxu0 %v547_v52  ;;  %566 = vmatpush3.bf16.msra.mxu1 %v547_v52 }
  0x12   : > { %584 = vtanh.f32 %v147_v2  ;;  %v551_v2 = vpack.c.bf16 %v318_v0, %v317_v63 }
  0x13   : > { %586 = vtanh.f32 %v150_v3 }
  0x14   : > { %588 = vtanh.f32 %v149_v4  ;;  %552 = vmatprep.subr.bf16.mxu0 %v551_v2  ;;  %562 = vmatprep.subr.bf16.mxu1 %v551_v2 }
  0x15   : > { %554 = vmatpush3.bf16.msra.mxu0 %v551_v2  ;;  %567 = vmatpush3.bf16.msra.mxu1 %v551_v2 }
  0x1b   : > { %v634_v5 = vpop.eup %582 }
  0x1c   : > { %v636_v6 = vpop.eup %584  ;;  %v161_v7 = vsub.f32 1.5, %v634_v5  ;;  %v186_v8 = vsub.f32 3.5, %v634_v5  ;;  %v224_v21 = vsub.f32 5.5, %v634_v5  ;;  %v266_v58 = vsub.f32 7.5, %v634_v5 }
  0x1d   : > { %v640_v9 = vpop.eup %586  ;;  %v160_v10 = vsub.f32 1.5, %v636_v6  ;;  %v185_v11 = vsub.f32 3.5, %v636_v6  ;;  %v223_v26 = vsub.f32 5.5, %v636_v6  ;;  %v265_v48 = vsub.f32 7.5, %v636_v6 }
  0x1e   : > { %v644_v12 = vpop.eup %588  ;;  %170 = vrot.lane.b32.xlu1 %v161_v7, %s599_s16  ;;  %v163_v13 = vsub.f32 1.5, %v640_v9  ;;  %v188_v14 = vsub.f32 3.5, %v640_v9  ;;  %v190_v15 = vmul.f32 %v186_v8, %v161_v7  ;;  %v226_v30 = vsub.f32 5.5, %v640_v9  ;;  %v320_v8 = vld [vmem:[%s697_s1 + $0x48] sm:$0xff] }
  0x1f   : > { %168 = vrot.lane.b32.xlu0 %v160_v10, %s599_s16  ;;  %v162_v16 = vsub.f32 1.5, %v644_v12  ;;  %v187_v17 = vsub.f32 3.5, %v644_v12  ;;  %v189_v18 = vmul.f32 %v185_v11, %v160_v10  ;;  %v225_v29 = vsub.f32 5.5, %v644_v12 }
  0x20   : > { %v192_v19 = vmul.f32 %v188_v14, %v163_v13  ;;  %v490_v20 = vadd.f32 -1.5, %v190_v15  ;;  %v231_v33 = vmul.f32 2.5, %v160_v10  ;;  %v232_v39 = vmul.f32 2.5, %v161_v7  ;;  %v319_v7 = vld [vmem:[%s697_s1 + $0x40] sm:$0xff] }
  0x21   : > { %v191_v24 = vmul.f32 %v187_v17, %v162_v16  ;;  %v489_v25 = vadd.f32 -1.5, %v189_v18  ;;  %v233_v42 = vmul.f32 2.5, %v162_v16  ;;  %v234_v44 = vmul.f32 2.5, %v163_v13 }
  0x22   : > { %174 = vrot.lane.b32.xlu1 %v163_v13, %s599_s16  ;;  %v492_v27 = vadd.f32 -1.5, %v192_v19  ;;  %v199_v28 = vmul.f32 0.5, %v490_v20  ;;  %v267_v54 = vsub.f32 7.5, %v644_v12  ;;  %v268_v57 = vsub.f32 7.5, %v640_v9 }
  0x23   : > { %172 = vrot.lane.b32.xlu0 %v162_v16, %s599_s16  ;;  %v491_v31 = vadd.f32 -1.5, %v191_v24  ;;  %v198_v32 = vmul.f32 0.5, %v489_v25  ;;  %v555_v13 = vpack.c.bf16 %v320_v8, %v319_v7 }
  0x24   : > { %v201_v37 = vmul.f32 0.5, %v492_v27  ;;  %v228_v38 = vmul.f32 %v224_v21, %v199_v28  ;;  %v274_v6 = vmul.f32 3.5, %v199_v28 }
  0x25   : > { %v200_v41 = vmul.f32 0.5, %v491_v31  ;;  %v227_v43 = vmul.f32 %v223_v26, %v198_v32  ;;  %v273_v62 = vmul.f32 3.5, %v198_v32  ;;  %556 = vmatprep.subr.bf16.mxu0 %v555_v13  ;;  %563 = vmatprep.subr.bf16.mxu1 %v555_v13 }
  0x26   : > { %v230_v45 = vmul.f32 %v226_v30, %v201_v37  ;;  %v236_v51 = vsub.f32 %v228_v38, %v232_v39  ;;  %v276_v12 = vmul.f32 3.5, %v201_v37  ;;  %558 = vmatpush3.bf16.msra.mxu0 %v555_v13  ;;  %568 = vmatpush3.bf16.msra.mxu1 %v555_v13 }
  0x27   : > { %210 = vrot.lane.b32.xlu1 %v200_v41, %s600_s25  ;;  %206 = vrot.lane.b32.xlu0 %v198_v32, %s600_s25  ;;  %v229_v46 = vmul.f32 %v225_v29, %v200_v41  ;;  %v235_v47 = vsub.f32 %v227_v43, %v231_v33  ;;  %v275_v61 = vmul.f32 3.5, %v200_v41 }
  0x28   : > { %v238_v56 = vsub.f32 %v230_v45, %v234_v44  ;;  %v241_v1 = vmul.f32 0.33333334, %v236_v51 }
  0x29   : > { %v237_v53 = vsub.f32 %v229_v46, %v233_v42  ;;  %v240_v55 = vmul.f32 0.33333334, %v235_v47 }
  0x2a   : > { %v243_v4 = vmul.f32 0.33333334, %v238_v56  ;;  %v270_v5 = vmul.f32 %v266_v58, %v241_v1 }
  0x2b   : > { %212 = vrot.lane.b32.xlu1 %v201_v37, %s600_s25  ;;  %208 = vrot.lane.b32.xlu0 %v199_v28, %s600_s25  ;;  %v242_v59 = vmul.f32 0.33333334, %v237_v53  ;;  %v269_v60 = vmul.f32 %v265_v48, %v240_v55 }
  0x2c   : > { %v272_v9 = vmul.f32 %v268_v57, %v243_v4  ;;  %v278_v17 = vsub.f32 %v270_v5, %v274_v6 }
  0x2d   : > { %v271_v3 = vmul.f32 %v267_v54, %v242_v59  ;;  %v277_v11 = vsub.f32 %v269_v60, %v273_v62 }
  0x2e   : > { %v280_v16 = vsub.f32 %v272_v9, %v276_v12  ;;  %v283_v19 = vmul.f32 0.25, %v278_v17 }
  0x2f   : > { %252 = vrot.lane.b32.xlu1 %v242_v59, %s601_s13  ;;  %248 = vrot.lane.b32.xlu0 %v240_v55, %s601_s13  ;;  %v279_v10 = vsub.f32 %v271_v3, %v275_v61  ;;  %v282_v15 = vmul.f32 0.25, %v277_v11 }
  0x30   : > { %v285_v18 = vmul.f32 0.25, %v280_v16 }
  0x31   : > { %v284_v14 = vmul.f32 0.25, %v279_v10 }
  0x33   : > { %254 = vrot.lane.b32.xlu1 %v243_v4, %s601_s13  ;;  %250 = vrot.lane.b32.xlu0 %v241_v1, %s601_s13 }
  0x37   : > { %294 = vrot.lane.b32.xlu1 %v284_v14, %s602_s14  ;;  %290 = vrot.lane.b32.xlu0 %v282_v15, %s602_s14 }
  0x3b   : > { %296 = vrot.lane.b32.xlu1 %v285_v18, %s602_s14  ;;  %292 = vrot.lane.b32.xlu0 %v283_v19, %s602_s14 }
  0x90   : > { %v171_v20 = vpop.permute.xlu1 %170 }
  0x91   : > { %182 = vst.msk [vmem:[#allocation2 + $0x8] sm:$0xff] %vm180_vm1, %v171_v20  ;;  %v169_v21 = vpop.permute.xlu0 %168 }
  0x92   : > { %181 = vst.msk [vmem:[#allocation2] sm:$0xff] %vm180_vm1, %v169_v21 }
  0x94   : > { %v175_v22 = vpop.permute.xlu1 %174 }
  0x95   : > { %184 = vst.msk [vmem:[#allocation2 + $0x18] sm:$0xff] %vm180_vm1, %v175_v22  ;;  %v173_v23 = vpop.permute.xlu0 %172 }
  0x96   : > { %183 = vst.msk [vmem:[#allocation2 + $0x10] sm:$0xff] %vm180_vm1, %v173_v23 }
  0x99   : > { %v211_v24 = vpop.permute.xlu1 %210  ;;  %v207_v25 = vpop.permute.xlu0 %206 }
  0x9a   : > { %221 = vst.msk [vmem:[#allocation2 + $0x10] sm:$0xff] %vm218_vm2, %v211_v24  ;;  %219 = vst.msk [vmem:[#allocation2] sm:$0xff] %vm218_vm2, %v207_v25 }
  0x9d   : > { %v213_v26 = vpop.permute.xlu1 %212  ;;  %v209_v27 = vpop.permute.xlu0 %208 }
  0x9e   : > { %222 = vst.msk [vmem:[#allocation2 + $0x18] sm:$0xff] %vm218_vm2, %v213_v26  ;;  %220 = vst.msk [vmem:[#allocation2 + $0x8] sm:$0xff] %vm218_vm2, %v209_v27 }
  0xa1   : > { %v253_v28 = vpop.permute.xlu1 %252  ;;  %v249_v29 = vpop.permute.xlu0 %248 }
  0xa2   : > { %263 = vst.msk [vmem:[#allocation2 + $0x10] sm:$0xff] %vm260_vm3, %v253_v28  ;;  %261 = vst.msk [vmem:[#allocation2] sm:$0xff] %vm260_vm3, %v249_v29 }
  0xa5   : > { %v255_v30 = vpop.permute.xlu1 %254  ;;  %v251_v31 = vpop.permute.xlu0 %250 }
  0xa6   : > { %264 = vst.msk [vmem:[#allocation2 + $0x18] sm:$0xff] %vm260_vm3, %v255_v30  ;;  %262 = vst.msk [vmem:[#allocation2 + $0x8] sm:$0xff] %vm260_vm3, %v251_v31 }
  0xa9   : > { %v295_v32 = vpop.permute.xlu1 %294  ;;  %v291_v33 = vpop.permute.xlu0 %290 }
  0xaa   : > { %305 = vst.msk [vmem:[#allocation2 + $0x10] sm:$0xff] %vm302_vm4, %v295_v32  ;;  %303 = vst.msk [vmem:[#allocation2] sm:$0xff] %vm302_vm4, %v291_v33 }
  0xad   : > { %v297_v34 = vpop.permute.xlu1 %296  ;;  %v293_v35 = vpop.permute.xlu0 %292 }
  0xae   : > { %306 = vst.msk [vmem:[#allocation2 + $0x18] sm:$0xff] %vm302_vm4, %v297_v34  ;;  %304 = vst.msk [vmem:[#allocation2 + $0x8] sm:$0xff] %vm302_vm4, %v293_v35 }
  0xb1   : > { %v307_v36 = vld [vmem:[#allocation2] sm:$0xff]  ;;  %v309_v37 = vld [vmem:[#allocation2 + $0x10] sm:$0xff] }
  0xb2   : > { %533 = vmatprep.mubr.msk.f32.mxu0 %vm321_vm5, %v307_v36  ;;  %536 = vmatprep.mubr.msk.f32.mxu1 %vm321_vm5, %v309_v37 }
  0xb5   : > { %v308_v38 = vld [vmem:[#allocation2 + $0x8] sm:$0xff]  ;;  %v310_v39 = vld [vmem:[#allocation2 + $0x18] sm:$0xff] }
  0xb6   : > { %534 = vmatmul.mubr.msk.f32.vlgmr.msra.gmra.mrb[0].mxu0 %vm321_vm5, %v308_v38  ;;  %537 = vmatmul.mubr.msk.f32.vlgmr.msra.gmra.mrb[0].mxu1 %vm321_vm5, %v310_v39 }
 0x189   : > { %v535_v40 = vpop.f32.mrb[0].mxu0  ;;  %v538_v41 = vpop.f32.mrb[0].mxu1 }
 0x18a   : > { %421 = vst.msk [vmem:[%s145_s17 + $0x8] sm:$0xff] %vm419_vm6, %v535_v40  ;;  %423 = vst.msk [vmem:[%s145_s17 + $0x18] sm:$0xff] %vm419_vm6, %v538_v41  ;;  %v400_v42 = vpop.f32.mrb[1].mxu0  ;;  %v410_v43 = vpop.f32.mrb[1].mxu1 }
 0x18b   : > { %420 = vst.msk [vmem:[%s145_s17] sm:$0xff] %vm419_vm6, %v400_v42  ;;  %422 = vst.msk [vmem:[%s145_s17 + $0x10] sm:$0xff] %vm419_vm6, %v410_v43 }
 0x18c PF: > { %s12_s9 = sadd.s32 1, %s596_s9  }
 0x18d   : > { %p9_p4 = scmp.ge.s32.totalorder %s12_s9, 6  }
 0x18f   :  { %11 = sbr.rel (!%p9_p4) target bundleno = 1 (0x1), region = 58 }

</bundles_post_ra>
